<compile_context>
chip_gen: v7x
topology: tpu7x:2x2x1
jax: 0.10.0
libtpu: 0.0.40
codegen_flags: <defaults>
</compile_context>

<pallas_src>
import jax
import jax.numpy as jnp
from jax.experimental import pallas as pl
from jax.experimental.pallas import tpu as pltpu

KN = 5              # conv1 kernel size
EPS = 1e-5          # BatchNorm2d default eps
LANE = 128          # TPU lane width
MAX_TILE_ROWS = 1024


def _round_up(x, m):
    return ((x + m - 1) // m) * m


def _pad2(a, rows, cols):
    return jnp.pad(a, ((0, rows - a.shape[0]), (0, cols - a.shape[1])))


def _hw_vmem_bytes():
    try:
        return int(pltpu.get_tpu_info().vmem_capacity_bytes)
    except Exception:
        return 64 * 1024 * 1024   # conservative fallback (v7x per-core VMEM)


def _pick_tile_and_vmem(nhw, K_pad, C_pad, C2_pad):
    """Row-tile size + vmem limit sized against the actual device VMEM."""
    cap = _hw_vmem_bytes()
    budget = int(cap * 0.70)      # leave headroom for compiler scratch / semaphores
    # Resident weights (conv1, conv2, conv3 + biases).  The default pipeline still
    # allocates 2 buffers for constant-index_map blocks, so budget the 2x factor.
    resident = 2 * 4 * (K_pad * C_pad + C_pad * C2_pad + C2_pad * C_pad
                        + 3 * C_pad + C2_pad)
    # Streaming bytes per pixel row (double-buffered): pass 1 moves one im2col row
    # (K_pad wide) in + one conv1 row (C_pad) out; pass 2 moves h + x in, out back.
    per_row = 2 * 4 * max(K_pad + C_pad, 3 * C_pad)
    avail = max(budget - resident, 64 * per_row)
    tile = max(8, (avail // per_row) // 8 * 8)
    tile = min(tile, MAX_TILE_ROWS, _round_up(nhw, 8))
    vmem_limit = max(32 * 1024 * 1024, min(int(cap * 0.75), 100 * 1024 * 1024))
    return tile, vmem_limit


# --------------------------------------------------------------------------------------
# Pass 1: conv1 as ONE im2col matmul -> store raw h, accumulate per-channel sum / sumsq.
# Grid = (core_split, steps): leading axis is parallel (v7x: one stats block per core),
# trailing axis is the reduction over row tiles ("arbitrary", init via pl.when).
# --------------------------------------------------------------------------------------
def make_conv1_stats_kernel(tile_rows, valid_rows, steps_per_split, needs_mask):
    def kernel(xcol_ref, w1_ref, b1_ref, h_ref, stats_ref):
        c = pl.program_id(0)
        i = pl.program_id(1)

        @pl.when(i == 0)
        def _init():
            stats_ref[...] = jnp.zeros_like(stats_ref)

        h = jnp.dot(xcol_ref[...], w1_ref[...],
                    preferred_element_type=jnp.float32) + b1_ref[...]
        h_ref[...] = h                      # lane-dense f32 store, consumed by pass 2

        if needs_mask:   # only traced when NHW was padded up to a tile multiple
            row = (c * steps_per_split + i) * tile_rows + \
                jax.lax.broadcasted_iota(jnp.int32, h.shape, 0)
            h = jnp.where(row < valid_rows, h, 0.0)

        stats_ref[0, 0:1, :] += jnp.sum(h, axis=0, keepdims=True)
        stats_ref[0, 1:2, :] += jnp.sum(h * h, axis=0, keepdims=True)

    return kernel


# --------------------------------------------------------------------------------------
# Pass 2: h -> (BN folded into conv2) 1x1 conv -> ReLU -> 1x1 conv -> + residual.
# No conv1 recompute, no im2col re-read, residual is a plain VPU add.
# --------------------------------------------------------------------------------------
def resblock_apply_kernel(h_ref, x_ref, w2_ref, b2_ref, w3_ref, b3_ref, out_ref):
    h2 = jnp.maximum(
        jnp.dot(h_ref[...], w2_ref[...], preferred_element_type=jnp.float32)
        + b2_ref[...], 0.0)
    h3 = jnp.dot(h2, w3_ref[...], preferred_element_type=jnp.float32) + b3_ref[...]
    out_ref[...] = (h3 + x_ref[...]).astype(out_ref.dtype)


def resblock_forward(x_nchw, params):
    """x_nchw: (N, C, H, W) float32. PyTorch training-mode ResBlock forward."""
    N, C, H, W = x_nchw.shape
    pad = (KN - 1) // 2
    KK = KN * KN
    NHW = N * H * W

    C_pad = _round_up(C, LANE)
    C2_pad = _round_up(2 * C, LANE)
    K_pad = _round_up(KK * C, LANE)

    tile, vmem_limit = _pick_tile_and_vmem(NHW, K_pad, C_pad, C2_pad)
    nhw_pad = _round_up(NHW, tile)
    n_tiles = nhw_pad // tile
    # v7x: 2 TensorCores share pass 1's reduction; harmless serialization on v5e/v6e.
    core_split = 2 if (n_tiles >= 2 and n_tiles % 2 == 0) else 1
    steps = n_tiles // core_split

    # ---- NCHW -> NHWC, spatial zero-pad, im2col built ONCE in the wrapper ----
    # TODO(synk): if traces show the wrapper-side im2col materialization dominating on
    # v5e, move patch construction in-kernel (halo-streamed NHWC tiles, per-tap slabs).
    x_nhwc = jnp.transpose(x_nchw, (0, 2, 3, 1)).astype(jnp.float32)
    x_sp = jnp.pad(x_nhwc, ((0, 0), (pad, pad), (pad, pad), (0, 0)))
    taps = [x_sp[:, kh:kh + H, kw:kw + W, :] for kh in range(KN) for kw in range(KN)]
    xcol = jnp.concatenate(taps, axis=-1).reshape(NHW, KK * C)
    xcol = _pad2(xcol, nhw_pad, K_pad)                       # lane/contraction-dense
    x_flat = _pad2(x_nhwc.reshape(NHW, C), nhw_pad, C_pad)   # residual stream

    # ---- weights into matmul layouts (PyTorch Conv2d weight is (Cout, Cin, kH, kW)) ----
    w1col = jnp.transpose(params["w1"], (2, 3, 1, 0)).reshape(KK * C, C)  # (25C, C)
    b1 = params["b1"].reshape(1, C)
    w2 = jnp.transpose(params["w2"][:, :, 0, 0], (1, 0))                  # (C, 2C)
    b2 = params["b2"].reshape(1, 2 * C)
    w3 = jnp.transpose(params["w3"][:, :, 0, 0], (1, 0))                  # (2C, C)
    b3 = params["b3"].reshape(1, C)

    # ---- pass 1: conv1 once -> raw h (stored) + batch statistics ----
    h_raw, stats = pl.pallas_call(
        make_conv1_stats_kernel(tile, NHW, steps, nhw_pad != NHW),
        out_shape=(jax.ShapeDtypeStruct((nhw_pad, C_pad), jnp.float32),
                   jax.ShapeDtypeStruct((core_split, 2, C_pad), jnp.float32)),
        grid=(core_split, steps),
        in_specs=[
            pl.BlockSpec((tile, K_pad), lambda c, i: (c * steps + i, 0)),  # im2col tile
            pl.BlockSpec((K_pad, C_pad), lambda c, i: (0, 0)),             # conv1 weight
            pl.BlockSpec((1, C_pad), lambda c, i: (0, 0)),                 # conv1 bias
        ],
        out_specs=(
            pl.BlockSpec((tile, C_pad), lambda c, i: (c * steps + i, 0)),  # raw conv1 out
            pl.BlockSpec((1, 2, C_pad), lambda c, i: (c, 0, 0)),           # per-core stats
        ),
        compiler_params=pltpu.CompilerParams(
            dimension_semantics=("parallel", "arbitrary"),
            vmem_limit_bytes=vmem_limit),
    )(xcol, _pad2(w1col, K_pad, C_pad), _pad2(b1, 1, C_pad))

    stats = jnp.sum(stats, axis=0)                  # combine per-core partial stats
    mean = stats[0, :C] / NHW
    var = jnp.maximum(stats[1, :C] / NHW - mean * mean, 0.0)  # biased var (training mode)
    # TODO(synk): E[h^2]-E[h]^2 is cancellation-prone for large-mean conv outputs; use a
    # shifted accumulation if real checkpoints need it.

    # ---- fold the BN affine into conv2 (tiny (C, 2C) rescale done in the wrapper) ----
    scale = params["gamma"] * jax.lax.rsqrt(var + EPS)
    shift = params["beta"] - mean * scale
    w2f = w2 * scale[:, None]
    b2f = b2 + (shift[None, :] @ w2)

    # ---- pass 2: h -> 1x1 conv -> ReLU -> 1x1 conv -> + residual, fully parallel ----
    out_pad = pl.pallas_call(
        resblock_apply_kernel,
        out_shape=jax.ShapeDtypeStruct((nhw_pad, C_pad), jnp.float32),
        grid=(n_tiles,),
        in_specs=[
            pl.BlockSpec((tile, C_pad), lambda i: (i, 0)),     # conv1 output tile
            pl.BlockSpec((tile, C_pad), lambda i: (i, 0)),     # residual tile
            pl.BlockSpec((C_pad, C2_pad), lambda i: (0, 0)),   # conv2 weight (BN folded)
            pl.BlockSpec((1, C2_pad), lambda i: (0, 0)),       # conv2 bias (BN folded)
            pl.BlockSpec((C2_pad, C_pad), lambda i: (0, 0)),   # conv3 weight
            pl.BlockSpec((1, C_pad), lambda i: (0, 0)),        # conv3 bias
        ],
        out_specs=pl.BlockSpec((tile, C_pad), lambda i: (i, 0)),  # lane-dense output
        compiler_params=pltpu.CompilerParams(
            dimension_semantics=("parallel",),
            vmem_limit_bytes=vmem_limit),
    )(h_raw, x_flat, _pad2(w2f, C_pad, C2_pad), _pad2(b2f, 1, C2_pad),
      _pad2(w3, C2_pad, C_pad), _pad2(b3, 1, C_pad))

    out = out_pad[:NHW, :C].reshape(N, H, W, C)
    return jnp.transpose(out, (0, 3, 1, 2))


# --------------------------------------------------------------------------------------
# Pure-JAX (XLA) reference matching the PyTorch training-mode forward pass.
# --------------------------------------------------------------------------------------
def resblock_reference(x_nchw, params):
    C = x_nchw.shape[1]
    h = jax.lax.conv_general_dilated(
        x_nchw, params["w1"], (1, 1), ((2, 2), (2, 2)),
        dimension_numbers=("NCHW", "OIHW", "NCHW")) + params["b1"].reshape(1, C, 1, 1)
    mean = jnp.mean(h, axis=(0, 2, 3), keepdims=True)
    var = jnp.mean((h - mean) ** 2, axis=(0, 2, 3), keepdims=True)
    h = (h - mean) / jnp.sqrt(var + EPS) * params["gamma"].reshape(1, C, 1, 1) \
        + params["beta"].reshape(1, C, 1, 1)
    h = jax.lax.conv_general_dilated(
        h, params["w2"], (1, 1), ((0, 0), (0, 0)),
        dimension_numbers=("NCHW", "OIHW", "NCHW")) + params["b2"].reshape(1, 2 * C, 1, 1)
    h = jax.nn.relu(h)
    h = jax.lax.conv_general_dilated(
        h, params["w3"], (1, 1), ((0, 0), (0, 0)),
        dimension_numbers=("NCHW", "OIHW", "NCHW")) + params["b3"].reshape(1, C, 1, 1)
    return h + x_nchw


def init_params(key, chnls):
    ks = jax.random.split(key, 6)
    scale = 0.1
    return {
        # PyTorch layouts: Conv2d weight is (Cout, Cin, kH, kW)
        "w1": scale * jax.random.normal(ks[0], (chnls, chnls, KN, KN), jnp.float32),
        "b1": scale * jax.random.normal(ks[1], (chnls,), jnp.float32),
        "w2": scale * jax.random.normal(ks[2], (2 * chnls, chnls, 1, 1), jnp.float32),
        "b2": scale * jax.random.normal(ks[3], (2 * chnls,), jnp.float32),
        "w3": scale * jax.random.normal(ks[4], (chnls, 2 * chnls, 1, 1), jnp.float32),
        "b3": scale * jax.random.normal(ks[5], (chnls,), jnp.float32),
        # BatchNorm2d init: gamma = 1, beta = 0
        "gamma": jnp.ones((chnls,), jnp.float32),
        "beta": jnp.zeros((chnls,), jnp.float32),
    }


if __name__ == "__main__":
    key = jax.random.PRNGKey(0)
    k_x, k_p = jax.random.split(key)

    N, C, H, W = 2, 4, 16, 16
    x = jax.random.normal(k_x, (N, C, H, W), jnp.float32)
    params = init_params(k_p, C)

    out = jax.block_until_ready(resblock_forward(x, params))
    ref = jax.block_until_ready(resblock_reference(x, params))

    assert out.shape == (N, C, H, W)
    assert jnp.allclose(out, ref, rtol=1e-4, atol=1e-4), float(jnp.max(jnp.abs(out - ref)))
    print("KERNEL_OK")
</pallas_src>

<mosaic_0001>
module attributes {stable_mosaic.version = 11 : i64} {
  func.func @kernel(%arg0: i32, %arg1: i32, %arg2: memref<512x128xf32, #tpu.memory_space<vmem>>, %arg3: memref<128x128xf32, #tpu.memory_space<vmem>>, %arg4: memref<1x128xf32, #tpu.memory_space<vmem>>, %arg5: memref<512x128xf32, #tpu.memory_space<vmem>>, %arg6: memref<1x2x128xf32, #tpu.memory_space<vmem>>) attributes {dimension_semantics = [#tpu.dimension_semantics<parallel>, #tpu.dimension_semantics<arbitrary>], iteration_bounds = array<i64: 1, 1>, scalar_prefetch = 0 : i64, scratch_operands = 0 : i64, tpu.core_type = #tpu.core_type<tc>, window_params = [{transform_indices = @transform_0, window_bounds = array<i64: 512, 128>}, {pipeline_mode = #tpu.pipeline_mode<synchronous>, transform_indices = @transform_1, window_bounds = array<i64: 128, 128>}, {pipeline_mode = #tpu.pipeline_mode<synchronous>, transform_indices = @transform_2, window_bounds = array<i64: 1, 128>}, {transform_indices = @transform_3, window_bounds = array<i64: 512, 128>}, {transform_indices = @transform_4, window_bounds = array<i64: 1, 2, 128>}]} {
    %c0_i32 = arith.constant 0 : i32
    %0 = arith.cmpi eq, %arg1, %c0_i32 : i32
    %1 = arith.extui %0 : i1 to i32
    %c0_i32_0 = arith.constant 0 : i32
    %2 = arith.cmpi ne, %1, %c0_i32_0 : i32
    scf.if %2 {
      %cst_21 = arith.constant 0.000000e+00 : f32
      %27 = vector.broadcast %cst_21 : f32 to vector<1x2x128xf32>
      %c0_22 = arith.constant 0 : index
      %c0_23 = arith.constant 0 : index
      %c0_24 = arith.constant 0 : index
      %28 = vector.load %arg6[%c0_22, %c0_23, %c0_24] : memref<1x2x128xf32, #tpu.memory_space<vmem>>, vector<1x2x128xf32>
      tpu.vector_store %arg6[%c0_22, %c0_23, %c0_24], %27 {strides = array<i32>} : memref<1x2x128xf32, #tpu.memory_space<vmem>>, vector<1x2x128xf32>,
    } else {
    }
    %c0 = arith.constant 0 : index
    %c0_1 = arith.constant 0 : index
    %3 = vector.load %arg2[%c0, %c0_1] : memref<512x128xf32, #tpu.memory_space<vmem>>, vector<512x128xf32>
    %c0_2 = arith.constant 0 : index
    %c0_3 = arith.constant 0 : index
    %4 = vector.load %arg3[%c0_2, %c0_3] : memref<128x128xf32, #tpu.memory_space<vmem>>, vector<128x128xf32>
    %cst = arith.constant dense<0.000000e+00> : vector<512x128xf32>
    %5 = tpu.matmul %3, %4, %cst {dimension_numbers = #tpu.dot_dimension_numbers<[1], [0], [0], [1], [0, 0, 1, 1], [], []>} : vector<512x128xf32>, vector<128x128xf32>, vector<512x128xf32> -> vector<512x128xf32>
    %c0_4 = arith.constant 0 : index
    %c0_5 = arith.constant 0 : index
    %6 = vector.load %arg4[%c0_4, %c0_5] : memref<1x128xf32, #tpu.memory_space<vmem>>, vector<1x128xf32>
    %7 = vector.broadcast %6 : vector<1x128xf32> to vector<512x128xf32>
    %8 = arith.addf %5, %7 : vector<512x128xf32>
    %c0_6 = arith.constant 0 : index
    %c0_7 = arith.constant 0 : index
    %9 = vector.load %arg5[%c0_6, %c0_7] : memref<512x128xf32, #tpu.memory_space<vmem>>, vector<512x128xf32>
    tpu.vector_store %arg5[%c0_6, %c0_7], %8 {strides = array<i32>} : memref<512x128xf32, #tpu.memory_space<vmem>>, vector<512x128xf32>,
    %c0_8 = arith.constant 0 : index
    %c0_9 = arith.constant 0 : index
    %c0_10 = arith.constant 0 : index
    %10 = vector.load %arg6[%c0_8, %c0_9, %c0_10] : memref<1x2x128xf32, #tpu.memory_space<vmem>>, vector<1x1x128xf32>
    %11 = vector.shape_cast %10 : vector<1x1x128xf32> to vector<1x128xf32>
    %cst_11 = arith.constant dense<0.000000e+00> : vector<128xf32>
    %12 = vector.multi_reduction <add>, %8, %cst_11 [0] : vector<512x128xf32> to vector<128xf32>
    %13 = vector.shape_cast %12 : vector<128xf32> to vector<1x128xf32>
    %14 = arith.addf %11, %13 : vector<1x128xf32>
    %c0_12 = arith.constant 0 : index
    %c0_13 = arith.constant 0 : index
    %c0_14 = arith.constant 0 : index
    %15 = vector.load %arg6[%c0_12, %c0_13, %c0_14] : memref<1x2x128xf32, #tpu.memory_space<vmem>>, vector<1x1x128xf32>
    %16 = vector.shape_cast %15 : vector<1x1x128xf32> to vector<1x128xf32>
    %17 = vector.shape_cast %14 : vector<1x128xf32> to vector<1x1x128xf32>
    tpu.vector_store %arg6[%c0_12, %c0_13, %c0_14], %17 {strides = array<i32>} : memref<1x2x128xf32, #tpu.memory_space<vmem>>, vector<1x1x128xf32>,
    %c0_15 = arith.constant 0 : index
    %c1 = arith.constant 1 : index
    %c0_16 = arith.constant 0 : index
    %18 = vector.load %arg6[%c0_15, %c1, %c0_16] : memref<1x2x128xf32, #tpu.memory_space<vmem>>, vector<1x1x128xf32>
    %19 = vector.shape_cast %18 : vector<1x1x128xf32> to vector<1x128xf32>
    %20 = arith.mulf %8, %8 : vector<512x128xf32>
    %cst_17 = arith.constant dense<0.000000e+00> : vector<128xf32>
    %21 = vector.multi_reduction <add>, %20, %cst_17 [0] : vector<512x128xf32> to vector<128xf32>
    %22 = vector.shape_cast %21 : vector<128xf32> to vector<1x128xf32>
    %23 = arith.addf %19, %22 : vector<1x128xf32>
    %c0_18 = arith.constant 0 : index
    %c1_19 = arith.constant 1 : index
    %c0_20 = arith.constant 0 : index
    %24 = vector.load %arg6[%c0_18, %c1_19, %c0_20] : memref<1x2x128xf32, #tpu.memory_space<vmem>>, vector<1x1x128xf32>
    %25 = vector.shape_cast %24 : vector<1x1x128xf32> to vector<1x128xf32>
    %26 = vector.shape_cast %23 : vector<1x128xf32> to vector<1x1x128xf32>
    tpu.vector_store %arg6[%c0_18, %c1_19, %c0_20], %26 {strides = array<i32>} : memref<1x2x128xf32, #tpu.memory_space<vmem>>, vector<1x1x128xf32>,
    return
  }
  func.func @transform_0(%arg0: i32, %arg1: i32) -> (i32, i32) {
    %c1_i32 = arith.constant 1 : i32
    %0 = arith.muli %arg0, %c1_i32 : i32
    %1 = arith.addi %0, %arg1 : i32
    %c0_i32 = arith.constant 0 : i32
    %c0_i32_0 = arith.constant 0 : i32
    return %1, %c0_i32 : i32, i32
  }
  func.func @transform_1(%arg0: i32, %arg1: i32) -> (i32, i32) {
    %c0_i32 = arith.constant 0 : i32
    %c0_i32_0 = arith.constant 0 : i32
    %c0_i32_1 = arith.constant 0 : i32
    return %c0_i32, %c0_i32_0 : i32, i32
  }
  func.func @transform_2(%arg0: i32, %arg1: i32) -> (i32, i32) {
    %c0_i32 = arith.constant 0 : i32
    %c0_i32_0 = arith.constant 0 : i32
    %c0_i32_1 = arith.constant 0 : i32
    return %c0_i32, %c0_i32_0 : i32, i32
  }
  func.func @transform_3(%arg0: i32, %arg1: i32) -> (i32, i32) {
    %c1_i32 = arith.constant 1 : i32
    %0 = arith.muli %arg0, %c1_i32 : i32
    %1 = arith.addi %0, %arg1 : i32
    %c0_i32 = arith.constant 0 : i32
    %c0_i32_0 = arith.constant 0 : i32
    return %1, %c0_i32 : i32, i32
  }
  func.func @transform_4(%arg0: i32, %arg1: i32) -> (i32, i32, i32) {
    %c0_i32 = arith.constant 0 : i32
    %c0_i32_0 = arith.constant 0 : i32
    %c0_i32_1 = arith.constant 0 : i32
    return %arg0, %c0_i32, %c0_i32_0 : i32, i32, i32
  }
}

</mosaic_0001>

<bundles_post_ra>
// kernel: tpu_custom_call.1
= control target key start
LH: loop header
LB: loop body
LE: loop exit
PB: predicated region body
PF: predicated region fallthrough
CT: control target
= control target key end

     0   :  { %10 = vsyncpa [#allocation3], 0  ;;  %s1549_s0 = inlined_call_operand.hbm [shape: f32[512,128], index: 0, kind: input, shape index: {}]   ;;  %s1550_s1 = inlined_call_operand.hbm [shape: f32[128,128], index: 1, kind: input, shape index: {}]   ;;  %s1551_s2 = inlined_call_operand.vmem [shape: f32[1,128], index: 2, kind: input, shape index: {}]   ;;  %s1552_s3 = inlined_call_operand.hbm [shape: f32[512,128], index: 3, kind: output, shape index: {0}]   ;;  %s1553_s4 = inlined_call_operand.hbm [shape: f32[1,2,128], index: 4, kind: output, shape index: {1}]  }
   0x1   :  { %11 = vsyncpa [#allocation6], 0 }
   0x2   :  { %12 = vsyncpa [#allocation4], 0 }
   0x3   :  { %13 = vsyncpa [#allocation9], 0  ;;  %s1199_s15 = smov [#allocation2]   ;;  %s1103_s19 = scalar_lea.hbm %s1549_s0, 8192 }
   0x4   :  { %s23_s16 = sshll.u32 %s1199_s15, 4  ;;  %p1104_p0 = scmp.ne.s32.totalorder %s1549_s0, %s1103_s19  ;;  %s24_s16 = int_to_ptr.vmem [resolvable:$true] %s23_s16 }
   0x5   :  { %p1107_p1 = scmp.lt.u32.totalorder %s1103_s19, %s1549_s0 }
   0x7   :  { %p1109_p2 = pnand %p1107_p1, %p1104_p0 }
   0x9   :  { %1112 = shalt.err (!%p1109_p2)
}
   0xa   :  { %s1113_s24 = scalar_lea.vmem %s24_s16, 8192  ;;  %p1118_p4 = scmp.lt.s32.totalorder %s24_s16, %s24_s16 }
   0xb   :  { %p1114_p3 = scmp.ne.s32.totalorder %s24_s16, %s1113_s24  ;;  %p1119_p5 = scmp.lt.s32.totalorder %s1113_s24, %s1113_s24 }
   0xd   :  { %p1120_p6 = por %p1119_p5, %p1118_p4 }
   0xf   :  { %p1121_p7 = pnand %p1120_p6, %p1114_p3 }
  0x11   :  { %1124 = shalt.err (!%p1121_p7)
}
  0x12   :  { %s1200_s25 = smov 128   ;;  %s1201_s26 = smov 8  }
  0x13   :  { %29 = dma.hbm_to_vmem [thread:$0]  %s1549_s0, 8192, %s24_s16, [#allocation3], %s1200_s25, %s1200_s25, %s1201_s26  }
  0x14   :  { %s1202_s29 = smov [#allocation5]   ;;  %s1125_s7 = scalar_lea.hbm %s1550_s1, 2048 }
  0x15   :  { %s35_s30 = sshll.u32 %s1202_s29, 4  ;;  %p1126_p8 = scmp.ne.s32.totalorder %s1550_s1, %s1125_s7  ;;  %s36_s30 = int_to_ptr.vmem [resolvable:$true] %s35_s30 }
  0x16   :  { %p1129_p9 = scmp.lt.u32.totalorder %s1125_s7, %s1550_s1 }
  0x18   :  { %p1131_p10 = pnand %p1129_p9, %p1126_p8 }
  0x1a   :  { %1134 = shalt.err (!%p1131_p10)
}
  0x1b   :  { %s1135_s12 = scalar_lea.vmem %s36_s30, 2048  ;;  %p1140_p12 = scmp.lt.s32.totalorder %s36_s30, %s36_s30 }
  0x1c   :  { %p1136_p11 = scmp.ne.s32.totalorder %s36_s30, %s1135_s12  ;;  %p1141_p13 = scmp.lt.s32.totalorder %s1135_s12, %s1135_s12 }
  0x1e   :  { %p1142_p0 = por %p1141_p13, %p1140_p12 }
  0x20   :  { %p1143_p1 = pnand %p1142_p0, %p1136_p11 }
  0x22   :  { %1146 = shalt.err (!%p1143_p1)
}
  0x23   :  { %41 = dma.hbm_to_vmem [thread:$0]  %s1550_s1, 2048, %s36_s30, [#allocation6], %s1200_s25, %s1200_s25, %s1201_s26  }
  0x24   :  { %1191 = dma.done.wait [#allocation3], 8192  }
  0x25   :  { %1192 = vsyncadd [#allocation3], 4294959104 }
  0x26   :  { %1193 = dma.done.wait [#allocation6], 2048  }
  0x27   :  { %1194 = vsyncadd [#allocation6], 4294965248  ;;  %v123_v0 = vld [vmem:[#allocation5] sm:$0xff]  ;;  %v124_v1 = vld [vmem:[#allocation5 + $0x8] sm:$0xff] }
  0x28   :  { %v125_v2 = vld [vmem:[#allocation5 + $0x10] sm:$0xff]  ;;  %v1048_v3 = vpack.c.bf16 %v124_v1, %v123_v0  ;;  %v126_v4 = vld [vmem:[#allocation5 + $0x18] sm:$0xff]  ;;  %v127_v6 = vld [vmem:[#allocation5 + $0x20] sm:$0xff] }
  0x29   :  { %v1052_v5 = vpack.c.bf16 %v126_v4, %v125_v2  ;;  %v128_v7 = vld [vmem:[#allocation5 + $0x28] sm:$0xff]  ;;  %v59_v9 = vld [vmem:[#allocation2] sm:$0xff]  ;;  %v129_v10 = vld [vmem:[#allocation5 + $0x30] sm:$0xff] }
  0x2a   :  { %1049 = vmatprep.subr.bf16.mxu0 %v1048_v3  ;;  %1080 = vmatprep.subr.bf16.mxu1 %v1048_v3  ;;  %v1056_v8 = vpack.c.bf16 %v128_v7, %v127_v6  ;;  %v130_v11 = vld [vmem:[#allocation5 + $0x38] sm:$0xff]  ;;  %v131_v13 = vld [vmem:[#allocation5 + $0x40] sm:$0xff]  ;;  %v132_v14 = vld [vmem:[#allocation5 + $0x48] sm:$0xff] }
  0x2b   :  { %1051 = vmatpush3.bf16.msra.mxu0 %v1048_v3  ;;  %1088 = vmatpush3.bf16.msra.mxu1 %v1048_v3  ;;  %v1060_v12 = vpack.c.bf16 %v130_v11, %v129_v10  ;;  %v1064_v15 = vpack.c.bf16 %v132_v14, %v131_v13  ;;  %v133_v16 = vld [vmem:[#allocation5 + $0x50] sm:$0xff]  ;;  %v134_v17 = vld [vmem:[#allocation5 + $0x58] sm:$0xff]  ;;  %v91_v18 = vld [vmem:[#allocation2 + $0x100] sm:$0xff] }
  0x2c   :  { %1053 = vmatprep.subr.bf16.mxu0 %v1052_v5  ;;  %1081 = vmatprep.subr.bf16.mxu1 %v1052_v5  ;;  %v1068_v19 = vpack.c.bf16 %v134_v17, %v133_v16  ;;  %v135_v20 = vld [vmem:[#allocation5 + $0x60] sm:$0xff]  ;;  %v136_v21 = vld [vmem:[#allocation5 + $0x68] sm:$0xff]  ;;  %v137_v23 = vld [vmem:[#allocation5 + $0x70] sm:$0xff] }
  0x2d   :  { %952 = vmatprep.mubr.f32.mxu0 %v59_v9  ;;  %1000 = vmatprep.mubr.f32.mxu1 %v91_v18  ;;  %v1072_v22 = vpack.c.bf16 %v136_v21, %v135_v20  ;;  %v138_v24 = vld [vmem:[#allocation5 + $0x78] sm:$0xff]  ;;  %v60_v26 = vld [vmem:[#allocation2 + $0x8] sm:$0xff]  ;;  %v61_v28 = vld [vmem:[#allocation2 + $0x10] sm:$0xff] }
  0x2e   :  { %v1076_v25 = vpack.c.bf16 %v138_v24, %v137_v23  ;;  %v92_v27 = vld [vmem:[#allocation2 + $0x108] sm:$0xff]  ;;  %v93_v29 = vld [vmem:[#allocation2 + $0x110] sm:$0xff]  ;;  %v62_v30 = vld [vmem:[#allocation2 + $0x18] sm:$0xff] }
  0x2f   :  { %1055 = vmatpush3.bf16.msra.mxu0 %v1052_v5  ;;  %1089 = vmatpush3.bf16.msra.mxu1 %v1052_v5  ;;  %v94_v31 = vld [vmem:[#allocation2 + $0x118] sm:$0xff]  ;;  %v63_v32 = vld [vmem:[#allocation2 + $0x20] sm:$0xff]  ;;  %v64_v34 = vld [vmem:[#allocation2 + $0x28] sm:$0xff] }
  0x30   :  { %1057 = vmatprep.subr.bf16.mxu0 %v1056_v8  ;;  %1082 = vmatprep.subr.bf16.mxu1 %v1056_v8  ;;  %v95_v33 = vld [vmem:[#allocation2 + $0x120] sm:$0xff]  ;;  %v96_v35 = vld [vmem:[#allocation2 + $0x128] sm:$0xff]  ;;  %v65_v36 = vld [vmem:[#allocation2 + $0x30] sm:$0xff] }
  0x31   :  { %v97_v37 = vld [vmem:[#allocation2 + $0x130] sm:$0xff]  ;;  %v66_v38 = vld [vmem:[#allocation2 + $0x38] sm:$0xff]  ;;  %v67_v40 = vld [vmem:[#allocation2 + $0x40] sm:$0xff] }
  0x32   :  { %v98_v39 = vld [vmem:[#allocation2 + $0x138] sm:$0xff]  ;;  %v99_v41 = vld [vmem:[#allocation2 + $0x140] sm:$0xff]  ;;  %v68_v42 = vld [vmem:[#allocation2 + $0x48] sm:$0xff] }
  0x33   :  { %1059 = vmatpush3.bf16.msra.mxu0 %v1056_v8  ;;  %1090 = vmatpush3.bf16.msra.mxu1 %v1056_v8  ;;  %v100_v43 = vld [vmem:[#allocation2 + $0x148] sm:$0xff]  ;;  %v69_v44 = vld [vmem:[#allocation2 + $0x50] sm:$0xff]  ;;  %v70_v46 = vld [vmem:[#allocation2 + $0x58] sm:$0xff] }
  0x34   :  { %1061 = vmatprep.subr.bf16.mxu0 %v1060_v12  ;;  %1083 = vmatprep.subr.bf16.mxu1 %v1060_v12  ;;  %v101_v45 = vld [vmem:[#allocation2 + $0x150] sm:$0xff]  ;;  %v102_v47 = vld [vmem:[#allocation2 + $0x158] sm:$0xff]  ;;  %v71_v48 = vld [vmem:[#allocation2 + $0x60] sm:$0xff] }
  0x35   :  { %v103_v49 = vld [vmem:[#allocation2 + $0x160] sm:$0xff]  ;;  %v72_v50 = vld [vmem:[#allocation2 + $0x68] sm:$0xff]  ;;  %v73_v52 = vld [vmem:[#allocation2 + $0x70] sm:$0xff] }
  0x36   :  { %v104_v51 = vld [vmem:[#allocation2 + $0x168] sm:$0xff]  ;;  %v105_v53 = vld [vmem:[#allocation2 + $0x170] sm:$0xff]  ;;  %v74_v54 = vld [vmem:[#allocation2 + $0x78] sm:$0xff] }
  0x37   :  { %1063 = vmatpush3.bf16.msra.mxu0 %v1060_v12  ;;  %1091 = vmatpush3.bf16.msra.mxu1 %v1060_v12  ;;  %v106_v55 = vld [vmem:[#allocation2 + $0x178] sm:$0xff]  ;;  %v75_v56 = vld [vmem:[#allocation2 + $0x80] sm:$0xff]  ;;  %v76_v58 = vld [vmem:[#allocation2 + $0x88] sm:$0xff] }
  0x38   :  { %1065 = vmatprep.subr.bf16.mxu0 %v1064_v15  ;;  %1084 = vmatprep.subr.bf16.mxu1 %v1064_v15  ;;  %v107_v57 = vld [vmem:[#allocation2 + $0x180] sm:$0xff]  ;;  %v108_v59 = vld [vmem:[#allocation2 + $0x188] sm:$0xff]  ;;  %v77_v60 = vld [vmem:[#allocation2 + $0x90] sm:$0xff] }
  0x39   :  { %v109_v61 = vld [vmem:[#allocation2 + $0x190] sm:$0xff]  ;;  %v78_v62 = vld [vmem:[#allocation2 + $0x98] sm:$0xff]  ;;  %v79_v0 = vld [vmem:[#allocation2 + $0xa0] sm:$0xff] }
  0x3a   :  { %v110_v63 = vld [vmem:[#allocation2 + $0x198] sm:$0xff]  ;;  %v111_v1 = vld [vmem:[#allocation2 + $0x1a0] sm:$0xff]  ;;  %v80_v2 = vld [vmem:[#allocation2 + $0xa8] sm:$0xff] }
  0x3b   :  { %1067 = vmatpush3.bf16.msra.mxu0 %v1064_v15  ;;  %1092 = vmatpush3.bf16.msra.mxu1 %v1064_v15  ;;  %v112_v3 = vld [vmem:[#allocation2 + $0x1a8] sm:$0xff]  ;;  %v81_v4 = vld [vmem:[#allocation2 + $0xb0] sm:$0xff]  ;;  %v82_v6 = vld [vmem:[#allocation2 + $0xb8] sm:$0xff] }
  0x3c   :  { %1069 = vmatprep.subr.bf16.mxu0 %v1068_v19  ;;  %1085 = vmatprep.subr.bf16.mxu1 %v1068_v19  ;;  %v113_v5 = vld [vmem:[#allocation2 + $0x1b0] sm:$0xff]  ;;  %v114_v7 = vld [vmem:[#allocation2 + $0x1b8] sm:$0xff]  ;;  %v83_v8 = vld [vmem:[#allocation2 + $0xc0] sm:$0xff] }
  0x3d   :  { %v115_v9 = vld [vmem:[#allocation2 + $0x1c0] sm:$0xff]  ;;  %v84_v10 = vld [vmem:[#allocation2 + $0xc8] sm:$0xff]  ;;  %v85_v12 = vld [vmem:[#allocation2 + $0xd0] sm:$0xff] }
  0x3e   :  { %v116_v11 = vld [vmem:[#allocation2 + $0x1c8] sm:$0xff]  ;;  %v117_v13 = vld [vmem:[#allocation2 + $0x1d0] sm:$0xff]  ;;  %v86_v14 = vld [vmem:[#allocation2 + $0xd8] sm:$0xff] }
  0x3f   :  { %1071 = vmatpush3.bf16.msra.mxu0 %v1068_v19  ;;  %1093 = vmatpush3.bf16.msra.mxu1 %v1068_v19  ;;  %v118_v15 = vld [vmem:[#allocation2 + $0x1d8] sm:$0xff]  ;;  %v87_v16 = vld [vmem:[#allocation2 + $0xe0] sm:$0xff]  ;;  %v88_v18 = vld [vmem:[#allocation2 + $0xe8] sm:$0xff] }
  0x40   :  { %1073 = vmatprep.subr.bf16.mxu0 %v1072_v22  ;;  %1086 = vmatprep.subr.bf16.mxu1 %v1072_v22  ;;  %v119_v17 = vld [vmem:[#allocation2 + $0x1e0] sm:$0xff]  ;;  %v120_v19 = vld [vmem:[#allocation2 + $0x1e8] sm:$0xff]  ;;  %v89_v20 = vld [vmem:[#allocation2 + $0xf0] sm:$0xff] }
  0x41   :  { %v121_v21 = vld [vmem:[#allocation2 + $0x1f0] sm:$0xff]  ;;  %v122_v23 = vld [vmem:[#allocation2 + $0x1f8] sm:$0xff]  ;;  %v1264_v24 = vld [vmem:[%s1551_s2] ss:$0 sm:$0xff]  ;;  %s1204_s2 = smov [#allocation7]  }
  0x42   :  { %s812_s15 = sshll.u32 %s1204_s2, 4  ;;  %s813_s15 = int_to_ptr.vmem [resolvable:$true] %s812_s15 }
  0x43   :  { %1075 = vmatpush3.bf16.msra.mxu0 %v1072_v22  ;;  %1094 = vmatpush3.bf16.msra.mxu1 %v1072_v22  ;;  %v90_v22 = vld [vmem:[#allocation2 + $0xf8] sm:$0xff]  ;;  %s1147_s16 = scalar_lea.vmem %s813_s15, 8192  ;;  %p1152_p3 = scmp.lt.s32.totalorder %s813_s15, %s813_s15 }
  0x44   :  { %1077 = vmatprep.subr.bf16.mxu0 %v1076_v25  ;;  %1087 = vmatprep.subr.bf16.mxu1 %v1076_v25  ;;  %p1148_p2 = scmp.ne.s32.totalorder %s813_s15, %s1147_s16  ;;  %p1153_p4 = scmp.lt.s32.totalorder %s1147_s16, %s1147_s16 }
  0x46   :  { %p1154_p5 = por %p1153_p4, %p1152_p3 }
  0x47   :  { %1079 = vmatpush3.bf16.msra.mxu0 %v1076_v25  ;;  %1095 = vmatpush3.bf16.msra.mxu1 %v1076_v25 }
  0x48   :  { %p1155_p6 = pnand %p1154_p5, %p1148_p2 }
  0x4a   :  { %953 = vmatmul.mubr.f32.vlgmr.msra.gmra.mrb[0].mxu0 %v60_v26  ;;  %1001 = vmatmul.mubr.f32.vlgmr.msra.gmra.mrb[0].mxu1 %v92_v27 }
  0x4b   :  { %955 = vmatprep.mubr.f32.mxu0 %v61_v28  ;;  %1003 = vmatprep.mubr.f32.mxu1 %v93_v29 }
  0x4e   :  { %956 = vmatmul.mubr.f32.gmra.mrb[2].mxu0 %v62_v30  ;;  %1004 = vmatmul.mubr.f32.gmra.mrb[2].mxu1 %v94_v31 }
  0x4f   :  { %958 = vmatprep.mubr.f32.mxu0 %v63_v32  ;;  %1006 = vmatprep.mubr.f32.mxu1 %v95_v33 }
  0x52   :  { %959 = vmatmul.mubr.f32.gmra.mrb[4].mxu0 %v64_v34  ;;  %1007 = vmatmul.mubr.f32.gmra.mrb[4].mxu1 %v96_v35 }
  0x53   :  { %961 = vmatprep.mubr.f32.mxu0 %v65_v36  ;;  %1009 = vmatprep.mubr.f32.mxu1 %v97_v37 }
  0x56   :  { %962 = vmatmul.mubr.f32.gmra.mrb[6].mxu0 %v66_v38  ;;  %1010 = vmatmul.mubr.f32.gmra.mrb[6].mxu1 %v98_v39 }
  0x57   :  { %964 = vmatprep.mubr.f32.mxu0 %v67_v40  ;;  %1012 = vmatprep.mubr.f32.mxu1 %v99_v41 }
  0x5a   :  { %965 = vmatmul.mubr.f32.gmra.mrb[8].mxu0 %v68_v42  ;;  %1013 = vmatmul.mubr.f32.gmra.mrb[8].mxu1 %v100_v43 }
  0x5b   :  { %967 = vmatprep.mubr.f32.mxu0 %v69_v44  ;;  %1015 = vmatprep.mubr.f32.mxu1 %v101_v45 }
  0x5e   :  { %968 = vmatmul.mubr.f32.gmra.mrb[10].mxu0 %v70_v46  ;;  %1016 = vmatmul.mubr.f32.gmra.mrb[10].mxu1 %v102_v47 }
  0x5f   :  { %970 = vmatprep.mubr.f32.mxu0 %v71_v48  ;;  %1018 = vmatprep.mubr.f32.mxu1 %v103_v49  ;;  %v1203_v49 = vmov 0.0  }
  0x60   :  { %58 = vst [vmem:[#allocation8] sm:$0x3] %v1203_v49 }
  0x62   :  { %971 = vmatmul.mubr.f32.gmra.mrb[12].mxu0 %v72_v50  ;;  %1019 = vmatmul.mubr.f32.gmra.mrb[12].mxu1 %v104_v51 }
  0x63   :  { %973 = vmatprep.mubr.f32.mxu0 %v73_v52  ;;  %1021 = vmatprep.mubr.f32.mxu1 %v105_v53 }
  0x66   :  { %974 = vmatmul.mubr.f32.gmra.mrb[14].mxu0 %v74_v54  ;;  %1022 = vmatmul.mubr.f32.gmra.mrb[14].mxu1 %v106_v55 }
  0x67   :  { %976 = vmatprep.mubr.f32.mxu0 %v75_v56  ;;  %1024 = vmatprep.mubr.f32.mxu1 %v107_v57 }
  0x6a   :  { %977 = vmatmul.mubr.f32.gmra.mrb[16].mxu0 %v76_v58  ;;  %1025 = vmatmul.mubr.f32.gmra.mrb[16].mxu1 %v108_v59 }
  0x6b   :  { %979 = vmatprep.mubr.f32.mxu0 %v77_v60  ;;  %1027 = vmatprep.mubr.f32.mxu1 %v109_v61 }
  0x6e   :  { %980 = vmatmul.mubr.f32.gmra.mrb[18].mxu0 %v78_v62  ;;  %1028 = vmatmul.mubr.f32.gmra.mrb[18].mxu1 %v110_v63 }
  0x6f   :  { %982 = vmatprep.mubr.f32.mxu0 %v79_v0  ;;  %1030 = vmatprep.mubr.f32.mxu1 %v111_v1 }
  0x72   :  { %983 = vmatmul.mubr.f32.gmra.mrb[20].mxu0 %v80_v2  ;;  %1031 = vmatmul.mubr.f32.gmra.mrb[20].mxu1 %v112_v3 }
  0x73   :  { %985 = vmatprep.mubr.f32.mxu0 %v81_v4  ;;  %1033 = vmatprep.mubr.f32.mxu1 %v113_v5 }
  0x76   :  { %986 = vmatmul.mubr.f32.gmra.mrb[22].mxu0 %v82_v6  ;;  %1034 = vmatmul.mubr.f32.gmra.mrb[22].mxu1 %v114_v7 }
  0x77   :  { %988 = vmatprep.mubr.f32.mxu0 %v83_v8  ;;  %1036 = vmatprep.mubr.f32.mxu1 %v115_v9 }
  0x7a   :  { %989 = vmatmul.mubr.f32.gmra.mrb[24].mxu0 %v84_v10  ;;  %1037 = vmatmul.mubr.f32.gmra.mrb[24].mxu1 %v116_v11 }
  0x7b   :  { %991 = vmatprep.mubr.f32.mxu0 %v85_v12  ;;  %1039 = vmatprep.mubr.f32.mxu1 %v117_v13 }
  0x7e   :  { %992 = vmatmul.mubr.f32.gmra.mrb[26].mxu0 %v86_v14  ;;  %1040 = vmatmul.mubr.f32.gmra.mrb[26].mxu1 %v118_v15 }
  0x7f   :  { %994 = vmatprep.mubr.f32.mxu0 %v87_v16  ;;  %1042 = vmatprep.mubr.f32.mxu1 %v119_v17 }
  0x82   :  { %995 = vmatmul.mubr.f32.gmra.mrb[28].mxu0 %v88_v18  ;;  %1043 = vmatmul.mubr.f32.gmra.mrb[28].mxu1 %v120_v19 }
  0x83   :  { %997 = vmatprep.mubr.f32.mxu0 %v89_v20  ;;  %1045 = vmatprep.mubr.f32.mxu1 %v121_v21 }
  0x86   :  { %998 = vmatmul.mubr.f32.gmra.mrb[30].mxu0 %v90_v22  ;;  %1046 = vmatmul.mubr.f32.gmra.mrb[30].mxu1 %v122_v23 }
 0x11d   :  { %v954_v25 = vpop.f32.mrb[0].mxu0  ;;  %v1002_v26 = vpop.f32.mrb[0].mxu1 }
 0x11e   :  { %v218_v27 = vadd.f32 %v954_v25, %v1264_v24  ;;  %v212_v28 = vpop.f32.mrb[1].mxu0  ;;  %v1268_v29 = vadd.f32 %v1002_v26, %v1264_v24  ;;  %v372_v30 = vpop.f32.mrb[1].mxu1 }
 0x11f   :  { %v213_v31 = vadd.f32 %v1264_v24, %v212_v28  ;;  %v1272_v32 = vadd.f32 %v1264_v24, %v372_v30 }
 0x120   :  { %532 = vst [vmem:[#allocation7 + $0x8] sm:$0xff] %v218_v27  ;;  %v669_v33 = vmul.f32 %v218_v27, %v218_v27  ;;  %564 = vst [vmem:[#allocation7 + $0x108] sm:$0xff] %v1268_v29 }
 0x121   :  { %531 = vst [vmem:[#allocation7] sm:$0xff] %v213_v31  ;;  %v596_v34 = vadd.f32 %v218_v27, %v213_v31  ;;  %v668_v35 = vmul.f32 %v213_v31, %v213_v31  ;;  %v957_v36 = vpop.f32.mrb[2].mxu0  ;;  %563 = vst [vmem:[#allocation7 + $0x100] sm:$0xff] %v1272_v32  ;;  %v1005_v37 = vpop.f32.mrb[2].mxu1 }
 0x122   :  { %v228_v38 = vadd.f32 %v957_v36, %v1264_v24  ;;  %v222_v39 = vpop.f32.mrb[3].mxu0  ;;  %v1278_v40 = vadd.f32 %v1005_v37, %v1264_v24  ;;  %v382_v41 = vpop.f32.mrb[3].mxu1 }
 0x123   :  { %v732_v42 = vadd.f32 %v669_v33, %v668_v35  ;;  %v223_v43 = vadd.f32 %v1264_v24, %v222_v39  ;;  %v1282_v44 = vadd.f32 %v1264_v24, %v382_v41 }
 0x124   :  { %534 = vst [vmem:[#allocation7 + $0x18] sm:$0xff] %v228_v38  ;;  %566 = vst [vmem:[#allocation7 + $0x118] sm:$0xff] %v1278_v40  ;;  %v671_v50 = vmul.f32 %v228_v38, %v228_v38 }
 0x125   :  { %533 = vst [vmem:[#allocation7 + $0x10] sm:$0xff] %v223_v43  ;;  %v597_v45 = vadd.f32 %v596_v34, %v223_v43  ;;  %v670_v46 = vmul.f32 %v223_v43, %v223_v43  ;;  %v960_v47 = vpop.f32.mrb[4].mxu0  ;;  %565 = vst [vmem:[#allocation7 + $0x110] sm:$0xff] %v1282_v44  ;;  %v1008_v48 = vpop.f32.mrb[4].mxu1 }
 0x126   :  { %v238_v51 = vadd.f32 %v960_v47, %v1264_v24  ;;  %v232_v52 = vpop.f32.mrb[5].mxu0  ;;  %v1288_v53 = vadd.f32 %v1008_v48, %v1264_v24  ;;  %v392_v54 = vpop.f32.mrb[5].mxu1 }
 0x127   :  { %v598_v55 = vadd.f32 %v597_v45, %v228_v38  ;;  %v733_v56 = vadd.f32 %v732_v42, %v670_v46  ;;  %v233_v57 = vadd.f32 %v1264_v24, %v232_v52  ;;  %v1292_v58 = vadd.f32 %v1264_v24, %v392_v54 }
 0x128   :  { %536 = vst [vmem:[#allocation7 + $0x28] sm:$0xff] %v238_v51  ;;  %568 = vst [vmem:[#allocation7 + $0x128] sm:$0xff] %v1288_v53  ;;  %v673_v0 = vmul.f32 %v238_v51, %v238_v51 }
 0x129   :  { %v734_v59 = vadd.f32 %v733_v56, %v671_v50  ;;  %535 = vst [vmem:[#allocation7 + $0x20] sm:$0xff] %v233_v57  ;;  %v599_v60 = vadd.f32 %v598_v55, %v233_v57  ;;  %v672_v61 = vmul.f32 %v233_v57, %v233_v57  ;;  %v963_v62 = vpop.f32.mrb[6].mxu0  ;;  %567 = vst [vmem:[#allocation7 + $0x120] sm:$0xff] %v1292_v58  ;;  %v1011_v63 = vpop.f32.mrb[6].mxu1 }
 0x12a   :  { %v248_v1 = vadd.f32 %v963_v62, %v1264_v24  ;;  %v242_v2 = vpop.f32.mrb[7].mxu0  ;;  %v1298_v3 = vadd.f32 %v1011_v63, %v1264_v24  ;;  %v402_v4 = vpop.f32.mrb[7].mxu1 }
 0x12b   :  { %v735_v5 = vadd.f32 %v734_v59, %v672_v61  ;;  %v243_v6 = vadd.f32 %v1264_v24, %v242_v2  ;;  %v600_v7 = vadd.f32 %v599_v60, %v238_v51  ;;  %v1302_v8 = vadd.f32 %v1264_v24, %v402_v4 }
 0x12c   :  { %538 = vst [vmem:[#allocation7 + $0x38] sm:$0xff] %v248_v1  ;;  %570 = vst [vmem:[#allocation7 + $0x138] sm:$0xff] %v1298_v3  ;;  %v675_v14 = vmul.f32 %v248_v1, %v248_v1 }
 0x12d   :  { %537 = vst [vmem:[#allocation7 + $0x30] sm:$0xff] %v243_v6  ;;  %v601_v9 = vadd.f32 %v600_v7, %v243_v6  ;;  %v674_v10 = vmul.f32 %v243_v6, %v243_v6  ;;  %v736_v11 = vadd.f32 %v735_v5, %v673_v0  ;;  %v966_v12 = vpop.f32.mrb[8].mxu0  ;;  %569 = vst [vmem:[#allocation7 + $0x130] sm:$0xff] %v1302_v8  ;;  %v1014_v13 = vpop.f32.mrb[8].mxu1 }
 0x12e   :  { %v258_v15 = vadd.f32 %v966_v12, %v1264_v24  ;;  %v252_v16 = vpop.f32.mrb[9].mxu0  ;;  %v1308_v17 = vadd.f32 %v1014_v13, %v1264_v24  ;;  %v412_v18 = vpop.f32.mrb[9].mxu1 }
 0x12f   :  { %v737_v19 = vadd.f32 %v736_v11, %v674_v10  ;;  %v253_v20 = vadd.f32 %v1264_v24, %v252_v16  ;;  %v602_v21 = vadd.f32 %v601_v9, %v248_v1  ;;  %v1312_v22 = vadd.f32 %v1264_v24, %v412_v18 }
 0x130   :  { %540 = vst [vmem:[#allocation7 + $0x48] sm:$0xff] %v258_v15  ;;  %572 = vst [vmem:[#allocation7 + $0x148] sm:$0xff] %v1308_v17  ;;  %v677_v30 = vmul.f32 %v258_v15, %v258_v15 }
 0x131   :  { %539 = vst [vmem:[#allocation7 + $0x40] sm:$0xff] %v253_v20  ;;  %v603_v23 = vadd.f32 %v602_v21, %v253_v20  ;;  %v676_v25 = vmul.f32 %v253_v20, %v253_v20  ;;  %v738_v26 = vadd.f32 %v737_v19, %v675_v14  ;;  %v969_v27 = vpop.f32.mrb[10].mxu0  ;;  %571 = vst [vmem:[#allocation7 + $0x140] sm:$0xff] %v1312_v22  ;;  %v1017_v28 = vpop.f32.mrb[10].mxu1 }
 0x132   :  { %v268_v31 = vadd.f32 %v969_v27, %v1264_v24  ;;  %v262_v33 = vpop.f32.mrb[11].mxu0  ;;  %v1318_v34 = vadd.f32 %v1017_v28, %v1264_v24  ;;  %v422_v35 = vpop.f32.mrb[11].mxu1 }
 0x133   :  { %v739_v36 = vadd.f32 %v738_v26, %v676_v25  ;;  %v263_v37 = vadd.f32 %v1264_v24, %v262_v33  ;;  %v604_v38 = vadd.f32 %v603_v23, %v258_v15  ;;  %v1322_v39 = vadd.f32 %v1264_v24, %v422_v35 }
 0x134   :  { %542 = vst [vmem:[#allocation7 + $0x58] sm:$0xff] %v268_v31  ;;  %574 = vst [vmem:[#allocation7 + $0x158] sm:$0xff] %v1318_v34  ;;  %v679_v47 = vmul.f32 %v268_v31, %v268_v31 }
 0x135   :  { %541 = vst [vmem:[#allocation7 + $0x50] sm:$0xff] %v263_v37  ;;  %v605_v41 = vadd.f32 %v604_v38, %v263_v37  ;;  %v678_v42 = vmul.f32 %v263_v37, %v263_v37  ;;  %v740_v43 = vadd.f32 %v739_v36, %v677_v30  ;;  %v972_v45 = vpop.f32.mrb[12].mxu0  ;;  %573 = vst [vmem:[#allocation7 + $0x150] sm:$0xff] %v1322_v39  ;;  %v1020_v46 = vpop.f32.mrb[12].mxu1 }
 0x136   :  { %v278_v48 = vadd.f32 %v972_v45, %v1264_v24  ;;  %v272_v49 = vpop.f32.mrb[13].mxu0  ;;  %v1328_v50 = vadd.f32 %v1020_v46, %v1264_v24  ;;  %v432_v51 = vpop.f32.mrb[13].mxu1 }
 0x137   :  { %v741_v52 = vadd.f32 %v740_v43, %v678_v42  ;;  %v273_v54 = vadd.f32 %v1264_v24, %v272_v49  ;;  %v606_v55 = vadd.f32 %v605_v41, %v268_v31  ;;  %v1332_v56 = vadd.f32 %v1264_v24, %v432_v51 }
 0x138   :  { %544 = vst [vmem:[#allocation7 + $0x68] sm:$0xff] %v278_v48  ;;  %576 = vst [vmem:[#allocation7 + $0x168] sm:$0xff] %v1328_v50  ;;  %v681_v63 = vmul.f32 %v278_v48, %v278_v48 }
 0x139   :  { %543 = vst [vmem:[#allocation7 + $0x60] sm:$0xff] %v273_v54  ;;  %v607_v57 = vadd.f32 %v606_v55, %v273_v54  ;;  %v680_v59 = vmul.f32 %v273_v54, %v273_v54  ;;  %v742_v60 = vadd.f32 %v741_v52, %v679_v47  ;;  %v975_v61 = vpop.f32.mrb[14].mxu0  ;;  %575 = vst [vmem:[#allocation7 + $0x160] sm:$0xff] %v1332_v56  ;;  %v1023_v62 = vpop.f32.mrb[14].mxu1 }
 0x13a   :  { %v288_v0 = vadd.f32 %v975_v61, %v1264_v24  ;;  %v282_v1 = vpop.f32.mrb[15].mxu0  ;;  %v1338_v2 = vadd.f32 %v1023_v62, %v1264_v24  ;;  %v442_v4 = vpop.f32.mrb[15].mxu1 }
 0x13b   :  { %v743_v5 = vadd.f32 %v742_v60, %v680_v59  ;;  %v283_v6 = vadd.f32 %v1264_v24, %v282_v1  ;;  %v608_v7 = vadd.f32 %v607_v57, %v278_v48  ;;  %v1342_v9 = vadd.f32 %v1264_v24, %v442_v4 }
 0x13c   :  { %546 = vst [vmem:[#allocation7 + $0x78] sm:$0xff] %v288_v0  ;;  %578 = vst [vmem:[#allocation7 + $0x178] sm:$0xff] %v1338_v2  ;;  %v683_v15 = vmul.f32 %v288_v0, %v288_v0 }
 0x13d   :  { %545 = vst [vmem:[#allocation7 + $0x70] sm:$0xff] %v283_v6  ;;  %v609_v10 = vadd.f32 %v608_v7, %v283_v6  ;;  %v682_v11 = vmul.f32 %v283_v6, %v283_v6  ;;  %v744_v12 = vadd.f32 %v743_v5, %v681_v63  ;;  %v978_v13 = vpop.f32.mrb[16].mxu0  ;;  %577 = vst [vmem:[#allocation7 + $0x170] sm:$0xff] %v1342_v9  ;;  %v1026_v14 = vpop.f32.mrb[16].mxu1 }
 0x13e   :  { %v298_v16 = vadd.f32 %v978_v13, %v1264_v24  ;;  %v292_v18 = vpop.f32.mrb[17].mxu0  ;;  %v1348_v19 = vadd.f32 %v1026_v14, %v1264_v24  ;;  %v452_v20 = vpop.f32.mrb[17].mxu1 }
 0x13f   :  { %v745_v21 = vadd.f32 %v744_v12, %v682_v11  ;;  %v293_v23 = vadd.f32 %v1264_v24, %v292_v18  ;;  %v610_v25 = vadd.f32 %v609_v10, %v288_v0  ;;  %v1352_v26 = vadd.f32 %v1264_v24, %v452_v20 }
 0x140   :  { %548 = vst [vmem:[#allocation7 + $0x88] sm:$0xff] %v298_v16  ;;  %580 = vst [vmem:[#allocation7 + $0x188] sm:$0xff] %v1348_v19  ;;  %v685_v35 = vmul.f32 %v298_v16, %v298_v16 }
 0x141   :  { %547 = vst [vmem:[#allocation7 + $0x80] sm:$0xff] %v293_v23  ;;  %v611_v27 = vadd.f32 %v610_v25, %v293_v23  ;;  %v684_v28 = vmul.f32 %v293_v23, %v293_v23  ;;  %v746_v30 = vadd.f32 %v745_v21, %v683_v15  ;;  %v981_v31 = vpop.f32.mrb[18].mxu0  ;;  %579 = vst [vmem:[#allocation7 + $0x180] sm:$0xff] %v1352_v26  ;;  %v1029_v33 = vpop.f32.mrb[18].mxu1 }
 0x142   :  { %v308_v36 = vadd.f32 %v981_v31, %v1264_v24  ;;  %v302_v37 = vpop.f32.mrb[19].mxu0  ;;  %v1358_v38 = vadd.f32 %v1029_v33, %v1264_v24  ;;  %v462_v41 = vpop.f32.mrb[19].mxu1 }
 0x143   :  { %v747_v42 = vadd.f32 %v746_v30, %v684_v28  ;;  %v303_v43 = vadd.f32 %v1264_v24, %v302_v37  ;;  %v612_v45 = vadd.f32 %v611_v27, %v298_v16  ;;  %v1362_v46 = vadd.f32 %v1264_v24, %v462_v41 }
 0x144   :  { %550 = vst [vmem:[#allocation7 + $0x98] sm:$0xff] %v308_v36  ;;  %582 = vst [vmem:[#allocation7 + $0x198] sm:$0xff] %v1358_v38  ;;  %v687_v54 = vmul.f32 %v308_v36, %v308_v36 }
 0x145   :  { %549 = vst [vmem:[#allocation7 + $0x90] sm:$0xff] %v303_v43  ;;  %v613_v47 = vadd.f32 %v612_v45, %v303_v43  ;;  %v686_v48 = vmul.f32 %v303_v43, %v303_v43  ;;  %v748_v49 = vadd.f32 %v747_v42, %v685_v35  ;;  %v984_v51 = vpop.f32.mrb[20].mxu0  ;;  %581 = vst [vmem:[#allocation7 + $0x190] sm:$0xff] %v1362_v46  ;;  %v1032_v52 = vpop.f32.mrb[20].mxu1 }
 0x146   :  { %v318_v55 = vadd.f32 %v984_v51, %v1264_v24  ;;  %v312_v57 = vpop.f32.mrb[21].mxu0  ;;  %v1368_v59 = vadd.f32 %v1032_v52, %v1264_v24  ;;  %v472_v60 = vpop.f32.mrb[21].mxu1 }
 0x147   :  { %v749_v61 = vadd.f32 %v748_v49, %v686_v48  ;;  %v313_v62 = vadd.f32 %v1264_v24, %v312_v57  ;;  %v614_v63 = vadd.f32 %v613_v47, %v308_v36  ;;  %v1372_v0 = vadd.f32 %v1264_v24, %v472_v60 }
 0x148   :  { %552 = vst [vmem:[#allocation7 + $0xa8] sm:$0xff] %v318_v55  ;;  %584 = vst [vmem:[#allocation7 + $0x1a8] sm:$0xff] %v1368_v59  ;;  %v689_v10 = vmul.f32 %v318_v55, %v318_v55 }
 0x149   :  { %551 = vst [vmem:[#allocation7 + $0xa0] sm:$0xff] %v313_v62  ;;  %v615_v1 = vadd.f32 %v614_v63, %v313_v62  ;;  %v688_v4 = vmul.f32 %v313_v62, %v313_v62  ;;  %v750_v5 = vadd.f32 %v749_v61, %v687_v54  ;;  %v987_v6 = vpop.f32.mrb[22].mxu0  ;;  %583 = vst [vmem:[#allocation7 + $0x1a0] sm:$0xff] %v1372_v0  ;;  %v1035_v7 = vpop.f32.mrb[22].mxu1 }
 0x14a   :  { %v328_v11 = vadd.f32 %v987_v6, %v1264_v24  ;;  %v322_v12 = vpop.f32.mrb[23].mxu0  ;;  %v1378_v13 = vadd.f32 %v1035_v7, %v1264_v24  ;;  %v482_v14 = vpop.f32.mrb[23].mxu1 }
 0x14b   :  { %v751_v15 = vadd.f32 %v750_v5, %v688_v4  ;;  %v323_v16 = vadd.f32 %v1264_v24, %v322_v12  ;;  %v616_v18 = vadd.f32 %v615_v1, %v318_v55  ;;  %v1382_v20 = vadd.f32 %v1264_v24, %v482_v14 }
 0x14c   :  { %554 = vst [vmem:[#allocation7 + $0xb8] sm:$0xff] %v328_v11  ;;  %586 = vst [vmem:[#allocation7 + $0x1b8] sm:$0xff] %v1378_v13  ;;  %v691_v30 = vmul.f32 %v328_v11, %v328_v11 }
 0x14d   :  { %553 = vst [vmem:[#allocation7 + $0xb0] sm:$0xff] %v323_v16  ;;  %v617_v21 = vadd.f32 %v616_v18, %v323_v16  ;;  %v690_v23 = vmul.f32 %v323_v16, %v323_v16  ;;  %v752_v25 = vadd.f32 %v751_v15, %v689_v10  ;;  %v990_v27 = vpop.f32.mrb[24].mxu0  ;;  %585 = vst [vmem:[#allocation7 + $0x1b0] sm:$0xff] %v1382_v20  ;;  %v1038_v28 = vpop.f32.mrb[24].mxu1 }
 0x14e   :  { %v338_v31 = vadd.f32 %v990_v27, %v1264_v24  ;;  %v332_v33 = vpop.f32.mrb[25].mxu0  ;;  %v1388_v35 = vadd.f32 %v1038_v28, %v1264_v24  ;;  %v492_v36 = vpop.f32.mrb[25].mxu1 }
 0x14f   :  { %v753_v37 = vadd.f32 %v752_v25, %v690_v23  ;;  %v333_v41 = vadd.f32 %v1264_v24, %v332_v33  ;;  %v618_v42 = vadd.f32 %v617_v21, %v328_v11  ;;  %v1392_v43 = vadd.f32 %v1264_v24, %v492_v36 }
 0x150   :  { %556 = vst [vmem:[#allocation7 + $0xc8] sm:$0xff] %v338_v31  ;;  %588 = vst [vmem:[#allocation7 + $0x1c8] sm:$0xff] %v1388_v35  ;;  %v693_v52 = vmul.f32 %v338_v31, %v338_v31 }
 0x151   :  { %555 = vst [vmem:[#allocation7 + $0xc0] sm:$0xff] %v333_v41  ;;  %v619_v45 = vadd.f32 %v618_v42, %v333_v41  ;;  %v692_v47 = vmul.f32 %v333_v41, %v333_v41  ;;  %v754_v48 = vadd.f32 %v753_v37, %v691_v30  ;;  %v993_v49 = vpop.f32.mrb[26].mxu0  ;;  %587 = vst [vmem:[#allocation7 + $0x1c0] sm:$0xff] %v1392_v43  ;;  %v1041_v51 = vpop.f32.mrb[26].mxu1 }
 0x152   :  { %v348_v54 = vadd.f32 %v993_v49, %v1264_v24  ;;  %v342_v55 = vpop.f32.mrb[27].mxu0  ;;  %v1398_v57 = vadd.f32 %v1041_v51, %v1264_v24  ;;  %v502_v60 = vpop.f32.mrb[27].mxu1 }
 0x153   :  { %v755_v61 = vadd.f32 %v754_v48, %v692_v47  ;;  %v343_v62 = vadd.f32 %v1264_v24, %v342_v55  ;;  %v620_v63 = vadd.f32 %v619_v45, %v338_v31  ;;  %v1402_v1 = vadd.f32 %v1264_v24, %v502_v60 }
 0x154   :  { %558 = vst [vmem:[#allocation7 + $0xd8] sm:$0xff] %v348_v54  ;;  %590 = vst [vmem:[#allocation7 + $0x1d8] sm:$0xff] %v1398_v57  ;;  %v695_v11 = vmul.f32 %v348_v54, %v348_v54 }
 0x155   :  { %557 = vst [vmem:[#allocation7 + $0xd0] sm:$0xff] %v343_v62  ;;  %v621_v4 = vadd.f32 %v620_v63, %v343_v62  ;;  %v694_v5 = vmul.f32 %v343_v62, %v343_v62  ;;  %v756_v6 = vadd.f32 %v755_v61, %v693_v52  ;;  %v996_v7 = vpop.f32.mrb[28].mxu0  ;;  %589 = vst [vmem:[#allocation7 + $0x1d0] sm:$0xff] %v1402_v1  ;;  %v1044_v10 = vpop.f32.mrb[28].mxu1 }
 0x156   :  { %v358_v12 = vadd.f32 %v996_v7, %v1264_v24  ;;  %v352_v14 = vpop.f32.mrb[29].mxu0  ;;  %v1408_v15 = vadd.f32 %v1044_v10, %v1264_v24  ;;  %v512_v16 = vpop.f32.mrb[29].mxu1 }
 0x157   :  { %v757_v18 = vadd.f32 %v756_v6, %v694_v5  ;;  %v353_v21 = vadd.f32 %v1264_v24, %v352_v14  ;;  %v622_v23 = vadd.f32 %v621_v4, %v348_v54  ;;  %v1412_v25 = vadd.f32 %v1264_v24, %v512_v16 }
 0x158   :  { %560 = vst [vmem:[#allocation7 + $0xe8] sm:$0xff] %v358_v12  ;;  %592 = vst [vmem:[#allocation7 + $0x1e8] sm:$0xff] %v1408_v15  ;;  %v697_v36 = vmul.f32 %v358_v12, %v358_v12 }
 0x159   :  { %559 = vst [vmem:[#allocation7 + $0xe0] sm:$0xff] %v353_v21  ;;  %v623_v27 = vadd.f32 %v622_v23, %v353_v21  ;;  %v696_v28 = vmul.f32 %v353_v21, %v353_v21  ;;  %v758_v30 = vadd.f32 %v757_v18, %v695_v11  ;;  %v999_v31 = vpop.f32.mrb[30].mxu0  ;;  %591 = vst [vmem:[#allocation7 + $0x1e0] sm:$0xff] %v1412_v25  ;;  %v1047_v33 = vpop.f32.mrb[30].mxu1 }
 0x15a   :  { %v368_v37 = vadd.f32 %v999_v31, %v1264_v24  ;;  %v362_v41 = vpop.f32.mrb[31].mxu0  ;;  %v1418_v42 = vadd.f32 %v1047_v33, %v1264_v24  ;;  %v522_v45 = vpop.f32.mrb[31].mxu1 }
 0x15b   :  { %v759_v47 = vadd.f32 %v758_v30, %v696_v28  ;;  %v363_v48 = vadd.f32 %v1264_v24, %v362_v41  ;;  %v624_v49 = vadd.f32 %v623_v27, %v358_v12  ;;  %v1422_v51 = vadd.f32 %v1264_v24, %v522_v45 }
 0x15c   :  { %562 = vst [vmem:[#allocation7 + $0xf8] sm:$0xff] %v368_v37  ;;  %594 = vst [vmem:[#allocation7 + $0x1f8] sm:$0xff] %v1418_v42 }
 0x15d   :  { %561 = vst [vmem:[#allocation7 + $0xf0] sm:$0xff] %v363_v48  ;;  %v625_v52 = vadd.f32 %v624_v49, %v363_v48  ;;  %v698_v54 = vmul.f32 %v363_v48, %v363_v48  ;;  %v760_v55 = vadd.f32 %v759_v47, %v697_v36  ;;  %593 = vst [vmem:[#allocation7 + $0x1f0] sm:$0xff] %v1422_v51 }
 0x15e   :  { %1158 = shalt.err (!%p1155_p6)
}
 0x15f   :  { %s1159_s19 = scalar_lea.hbm %s1552_s3, 8192 }
 0x160   :  { %p1160_p7 = scmp.ne.s32.totalorder %s1552_s3, %s1159_s19  ;;  %p1163_p8 = scmp.lt.u32.totalorder %s1159_s19, %s1552_s3 }
 0x162   :  { %p1165_p9 = pnand %p1163_p8, %p1160_p7 }
 0x164   :  { %1168 = shalt.err (!%p1165_p9)
}
 0x165   :  { %818 = dma.vmem_to_hbm [thread:$0]  %s813_s15, 8192, %s1552_s3, [#allocation4], %s1200_s25, %s1200_s25, %s1201_s26   ;;  %v699_v24 = vmul.f32 %v368_v37, %v368_v37  ;;  %v761_v60 = vadd.f32 %v760_v55, %v698_v54  ;;  %v626_v61 = vadd.f32 %v625_v52, %v368_v37  ;;  %v700_v62 = vmul.f32 %v1272_v32, %v1272_v32 }
 0x166   :  { %v701_v5 = vmul.f32 %v1268_v29, %v1268_v29  ;;  %v702_v10 = vmul.f32 %v1282_v44, %v1282_v44  ;;  %v703_v14 = vmul.f32 %v1278_v40, %v1278_v40  ;;  %s1205_s3 = smov [#allocation8]  }
 0x167   :  { %v627_v63 = vadd.f32 %v626_v61, %v1272_v32  ;;  %v762_v4 = vadd.f32 %v761_v60, %v699_v24  ;;  %v704_v32 = vmul.f32 %v1292_v58, %v1292_v58  ;;  %s825_s25 = sshll.u32 %s1205_s3, 4  ;;  %s826_s25 = int_to_ptr.vmem [resolvable:$true] %s825_s25 }
 0x168   :  { %s1169_s26 = scalar_lea.vmem %s826_s25, 32  ;;  %p1174_p11 = scmp.lt.s32.totalorder %s826_s25, %s826_s25 }
 0x169   :  { %v763_v6 = vadd.f32 %v762_v4, %v700_v62  ;;  %v628_v7 = vadd.f32 %v627_v63, %v1268_v29  ;;  %v705_v29 = vmul.f32 %v1288_v53, %v1288_v53  ;;  %p1170_p10 = scmp.ne.s32.totalorder %s826_s25, %s1169_s26  ;;  %p1175_p12 = scmp.lt.s32.totalorder %s1169_s26, %s1169_s26 }
 0x16b   :  { %v629_v11 = vadd.f32 %v628_v7, %v1282_v44  ;;  %v764_v12 = vadd.f32 %v763_v6, %v701_v5  ;;  %v706_v44 = vmul.f32 %v1302_v8, %v1302_v8  ;;  %p1176_p13 = por %p1175_p12, %p1174_p11 }
 0x16d   :  { %v765_v16 = vadd.f32 %v764_v12, %v702_v10  ;;  %v630_v18 = vadd.f32 %v629_v11, %v1278_v40  ;;  %v707_v40 = vmul.f32 %v1298_v3, %v1298_v3  ;;  %p1177_p0 = pnand %p1176_p13, %p1170_p10 }
 0x16f   :  { %v631_v21 = vadd.f32 %v630_v18, %v1292_v58  ;;  %v766_v23 = vadd.f32 %v765_v16, %v703_v14  ;;  %v708_v58 = vmul.f32 %v1312_v22, %v1312_v22 }
 0x171   :  { %v767_v27 = vadd.f32 %v766_v23, %v704_v32  ;;  %v632_v28 = vadd.f32 %v631_v21, %v1288_v53  ;;  %v709_v53 = vmul.f32 %v1308_v17, %v1308_v17 }
 0x173   :  { %v633_v30 = vadd.f32 %v632_v28, %v1302_v8  ;;  %v768_v31 = vadd.f32 %v767_v27, %v705_v29  ;;  %v710_v8 = vmul.f32 %v1322_v39, %v1322_v39 }
 0x175   :  { %v769_v33 = vadd.f32 %v768_v31, %v706_v44  ;;  %v634_v36 = vadd.f32 %v633_v30, %v1298_v3  ;;  %v711_v3 = vmul.f32 %v1318_v34, %v1318_v34 }
 0x177   :  { %v635_v37 = vadd.f32 %v634_v36, %v1312_v22  ;;  %v770_v41 = vadd.f32 %v769_v33, %v707_v40  ;;  %v712_v22 = vmul.f32 %v1332_v56, %v1332_v56 }
 0x179   :  { %v771_v45 = vadd.f32 %v770_v41, %v708_v58  ;;  %v636_v47 = vadd.f32 %v635_v37, %v1308_v17  ;;  %v713_v17 = vmul.f32 %v1328_v50, %v1328_v50 }
 0x17b   :  { %v637_v48 = vadd.f32 %v636_v47, %v1322_v39  ;;  %v772_v49 = vadd.f32 %v771_v45, %v709_v53  ;;  %v714_v39 = vmul.f32 %v1342_v9, %v1342_v9 }
 0x17d   :  { %v773_v52 = vadd.f32 %v772_v49, %v710_v8  ;;  %v638_v54 = vadd.f32 %v637_v48, %v1318_v34  ;;  %v715_v34 = vmul.f32 %v1338_v2, %v1338_v2 }
 0x17f   :  { %v639_v55 = vadd.f32 %v638_v54, %v1332_v56  ;;  %v774_v24 = vadd.f32 %v773_v52, %v711_v3  ;;  %v716_v56 = vmul.f32 %v1352_v26, %v1352_v26 }
 0x181   :  { %v775_v60 = vadd.f32 %v774_v24, %v712_v22  ;;  %v640_v61 = vadd.f32 %v639_v55, %v1328_v50  ;;  %v717_v50 = vmul.f32 %v1348_v19, %v1348_v19 }
 0x183   :  { %v641_v62 = vadd.f32 %v640_v61, %v1342_v9  ;;  %v776_v63 = vadd.f32 %v775_v60, %v713_v17  ;;  %v718_v9 = vmul.f32 %v1362_v46, %v1362_v46 }
 0x185   :  { %v777_v4 = vadd.f32 %v776_v63, %v714_v39  ;;  %v642_v5 = vadd.f32 %v641_v62, %v1338_v2  ;;  %v719_v2 = vmul.f32 %v1358_v38, %v1358_v38  ;;  %v595_v63 = vld [vmem:[#allocation8] sm:$0x1] }
 0x187   :  { %v643_v6 = vadd.f32 %v642_v5, %v1352_v26  ;;  %v778_v7 = vadd.f32 %v777_v4, %v715_v34  ;;  %v720_v26 = vmul.f32 %v1372_v0, %v1372_v0  ;;  %v667_v4 = vld [vmem:[#allocation8 + $0x1] sm:$0x1] }
 0x189   :  { %v779_v10 = vadd.f32 %v778_v7, %v716_v56  ;;  %v644_v11 = vadd.f32 %v643_v6, %v1348_v19  ;;  %v721_v19 = vmul.f32 %v1368_v59, %v1368_v59 }
 0x18b   :  { %v645_v12 = vadd.f32 %v644_v11, %v1362_v46  ;;  %v780_v14 = vadd.f32 %v779_v10, %v717_v50  ;;  %v722_v46 = vmul.f32 %v1382_v20, %v1382_v20 }
 0x18d   :  { %v781_v16 = vadd.f32 %v780_v14, %v718_v9  ;;  %v646_v18 = vadd.f32 %v645_v12, %v1358_v38  ;;  %v723_v38 = vmul.f32 %v1378_v13, %v1378_v13 }
 0x18f   :  { %v647_v32 = vadd.f32 %v646_v18, %v1372_v0  ;;  %v782_v21 = vadd.f32 %v781_v16, %v719_v2  ;;  %v724_v0 = vmul.f32 %v1392_v43, %v1392_v43 }
 0x191   :  { %v783_v23 = vadd.f32 %v782_v21, %v720_v26  ;;  %v648_v29 = vadd.f32 %v647_v32, %v1368_v59  ;;  %v725_v59 = vmul.f32 %v1388_v35, %v1388_v35 }
 0x193   :  { %v649_v27 = vadd.f32 %v648_v29, %v1382_v20  ;;  %v784_v28 = vadd.f32 %v783_v23, %v721_v19  ;;  %v726_v20 = vmul.f32 %v1402_v1, %v1402_v1 }
 0x195   :  { %v785_v44 = vadd.f32 %v784_v28, %v722_v46  ;;  %v650_v30 = vadd.f32 %v649_v27, %v1378_v13  ;;  %v727_v13 = vmul.f32 %v1398_v57, %v1398_v57 }
 0x197   :  { %v651_v31 = vadd.f32 %v650_v30, %v1392_v43  ;;  %v786_v40 = vadd.f32 %v785_v44, %v723_v38  ;;  %v728_v43 = vmul.f32 %v1412_v25, %v1412_v25 }
 0x199   :  { %v787_v33 = vadd.f32 %v786_v40, %v724_v0  ;;  %v652_v36 = vadd.f32 %v651_v31, %v1388_v35  ;;  %v729_v35 = vmul.f32 %v1408_v15, %v1408_v15 }
 0x19b   :  { %v653_v58 = vadd.f32 %v652_v36, %v1402_v1  ;;  %v788_v37 = vadd.f32 %v787_v33, %v725_v59  ;;  %v730_v1 = vmul.f32 %v1422_v51, %v1422_v51 }
 0x19d   :  { %v789_v41 = vadd.f32 %v788_v37, %v726_v20  ;;  %v654_v53 = vadd.f32 %v653_v58, %v1398_v57  ;;  %v731_v57 = vmul.f32 %v1418_v42, %v1418_v42 }
 0x19f   :  { %v655_v45 = vadd.f32 %v654_v53, %v1412_v25  ;;  %v790_v47 = vadd.f32 %v789_v41, %v727_v13 }
 0x1a1   :  { %v791_v8 = vadd.f32 %v790_v47, %v728_v43  ;;  %v656_v48 = vadd.f32 %v655_v45, %v1408_v15 }
 0x1a3   :  { %v657_v49 = vadd.f32 %v656_v48, %v1422_v51  ;;  %v792_v3 = vadd.f32 %v791_v8, %v729_v35 }
 0x1a5   :  { %v658_v52 = vadd.f32 %v657_v49, %v1418_v42  ;;  %v793_v54 = vadd.f32 %v792_v3, %v730_v1 }
 0x1a7   :  { %v659_v25 = vrot.slane %v658_v52, 4  ;;  %v794_v22 = vadd.f32 %v793_v54, %v731_v57 }
 0x1a9   :  { %v660_v55 = vadd.f32 %v659_v25, %v658_v52  ;;  %v795_v24 = vrot.slane %v794_v22, 4 }
 0x1ab   :  { %v661_v17 = vrot.slane %v660_v55, 2  ;;  %v796_v60 = vadd.f32 %v795_v24, %v794_v22 }
 0x1ad   :  { %v662_v61 = vadd.f32 %v661_v17, %v660_v55  ;;  %v797_v15 = vrot.slane %v796_v60, 2 }
 0x1af   :  { %v663_v39 = vrot.slane %v662_v61, 1  ;;  %v798_v62 = vadd.f32 %v797_v15, %v796_v60 }
 0x1b1   :  { %v664_v34 = vadd.f32 %v663_v39, %v662_v61  ;;  %v799_v51 = vrot.slane %v798_v62, 1 }
 0x1b3   :  { %v665_v5 = vadd.f32 %v664_v34, %v595_v63  ;;  %v800_v56 = vadd.f32 %v799_v51, %v798_v62 }
 0x1b5   :  { %666 = vst [vmem:[#allocation8] sm:$0x1] %v665_v5  ;;  %v801_v42 = vadd.f32 %v800_v56, %v667_v4 }
 0x1b7   :  { %802 = vst [vmem:[#allocation8 + $0x1] sm:$0x1] %v801_v42 }
 0x1b8   :  { %1180 = shalt.err (!%p1177_p0)
}
 0x1b9   :  { %s1181_s30 = scalar_lea.hbm %s1553_s4, 32 }
 0x1ba   :  { %p1182_p1 = scmp.ne.s32.totalorder %s1553_s4, %s1181_s30  ;;  %p1185_p2 = scmp.lt.u32.totalorder %s1181_s30, %s1553_s4 }
 0x1bc   :  { %p1187_p3 = pnand %p1185_p2, %p1182_p1 }
 0x1be   :  { %1190 = shalt.err (!%p1187_p3)
}
 0x1bf   :  { %828 = dma.vmem_to_hbm [thread:$0]  %s826_s25, 32, %s1553_s4, [#allocation9]  }
 0x1c0   :  { %1195 = dma.done.wait [#allocation4], 8192  }
 0x1c1   :  { %1196 = vsyncadd [#allocation4], 4294959104 }
 0x1c2   :  { %1197 = dma.done.wait [#allocation9], 32  }
 0x1c3   :  { %1198 = vsyncadd [#allocation9], 4294967264 }
 0x1c4   :  { %835 = vsyncpa [#allocation3], 1 }
 0x1c5   :  { %836 = vsyncpa [#allocation6], 1 }
 0x1c6   :  { %837 = vsyncpa [#allocation4], 1 }
 0x1c7   :  { %838 = vsyncpa [#allocation9], 1 }

</bundles_post_ra>
